<compile_context>
chip_gen: v5e
topology: v5e:2x2
jax: 0.10.0
libtpu: 0.0.40
codegen_flags: <defaults>
</compile_context>

<pallas_src>
import functools

import jax
import jax.numpy as jnp
from jax.experimental import pallas as pl
from jax.experimental.pallas import tpu as pltpu


def _patch_embed_kernel(p_ref, w_ref, b_ref, g_ref, beta_ref, o_ref, *, eps):
    # p_ref:    (TN, K)     bf16 im2col patches (one token tile, batch flattened)
    # w_ref:    (K, Cemb)   bf16 flattened conv weight
    # b_ref:    (1, Cemb)   f32 conv bias
    # g_ref:    (1, Cemb)   f32 LayerNorm gamma
    # beta_ref: (1, Cemb)   f32 LayerNorm beta
    # o_ref:    (TN, Cemb)

    # Conv-as-GEMM on the MXU: bf16 operands, f32 accumulation.
    y = jnp.dot(p_ref[...], w_ref[...], preferred_element_type=jnp.float32)
    y = y + b_ref[...]                                          # (TN, Cemb) f32

    # LayerNorm over the embedding axis (f32 elementwise math on the VPU).
    mean = jnp.mean(y, axis=-1, keepdims=True)
    centered = y - mean
    var = jnp.mean(centered * centered, axis=-1, keepdims=True)
    yn = centered * jax.lax.rsqrt(var + eps)
    yn = yn * g_ref[...] + beta_ref[...]

    o_ref[...] = yn.astype(o_ref.dtype)


def _im2col(x, k, stride, pad):
    """(B, Cin, H, W) -> (B, N, Cin*k*k) patches whose K ordering matches
    PyTorch's Conv2d weight flattening (Cin-major, then kh, then kw).
    Done in x's dtype (pass bf16 in for halved intermediate HBM traffic)."""
    B, Cin, H, W = x.shape
    Ho = (H + 2 * pad - k) // stride + 1
    Wo = (W + 2 * pad - k) // stride + 1
    xp = jnp.pad(x, ((0, 0), (0, 0), (pad, pad), (pad, pad)))
    rows = []
    for dy in range(k):
        cols = []
        for dx in range(k):
            cols.append(xp[:, :, dy:dy + stride * Ho:stride,
                               dx:dx + stride * Wo:stride])     # (B, Cin, Ho, Wo)
        rows.append(jnp.stack(cols, axis=2))                    # (B, Cin, kw, Ho, Wo)
    p = jnp.stack(rows, axis=2)                                 # (B, Cin, kh, kw, Ho, Wo)
    p = p.transpose(0, 4, 5, 1, 2, 3).reshape(B, Ho * Wo, Cin * k * k)
    return p, Ho, Wo


def patch_embedding(x, w, b, gamma, beta, *, stride=2, eps=1e-5,
                    token_tile=1024, out_dtype=None):
    """x: (B, Cin, H, W); w: (Cemb, Cin, k, k) (PyTorch Conv2d layout);
    b, gamma, beta: (Cemb,). Returns ((B, N, Cemb), (Ho, Wo))."""
    Cemb, Cin, kh, kw = w.shape
    assert kh == kw, "square kernel expected"
    pad = kh // 2
    if out_dtype is None:
        out_dtype = x.dtype

    # im2col directly in bf16: halves the HBM traffic of the (B*N, K)
    # intermediate vs. materializing it in f32 and casting later.
    patches, Ho, Wo = _im2col(x.astype(jnp.bfloat16), kh, stride, pad)
    B, N, K = patches.shape

    # Flatten batch into the token axis: one long, uniform token stream.
    BN = B * N
    patches = patches.reshape(BN, K)

    # bf16 MXU operands (f32 accumulation inside the kernel); LN params in f32.
    w2 = w.reshape(Cemb, K).T.astype(jnp.bfloat16)              # (K, Cemb)
    b2 = b.reshape(1, Cemb).astype(jnp.float32)
    g2 = gamma.reshape(1, Cemb).astype(jnp.float32)
    be2 = beta.reshape(1, Cemb).astype(jnp.float32)

    # Large fixed token tile + pl.cdiv grid (partial last block is discarded
    # on writeback; LN is per-row so padded rows cannot contaminate results).
    # token_tile=1024 keeps double-buffered VMEM ~1.2 MiB -> safe on v5e/v6e/v7x.
    tn = min(token_tile, BN)
    grid = (pl.cdiv(BN, tn),)

    kernel = functools.partial(_patch_embed_kernel, eps=eps)

    out = pl.pallas_call(
        kernel,
        out_shape=jax.ShapeDtypeStruct((BN, Cemb), out_dtype),
        grid=grid,
        in_specs=[
            pl.BlockSpec((tn, K), lambda i: (i, 0)),            # patches tile
            pl.BlockSpec((K, Cemb), lambda i: (0, 0)),          # conv weight
            pl.BlockSpec((1, Cemb), lambda i: (0, 0)),          # conv bias
            pl.BlockSpec((1, Cemb), lambda i: (0, 0)),          # LN gamma
            pl.BlockSpec((1, Cemb), lambda i: (0, 0)),          # LN beta
        ],
        out_specs=pl.BlockSpec((tn, Cemb), lambda i: (i, 0)),
        compiler_params=pltpu.CompilerParams(
            dimension_semantics=("parallel",)),
    )(patches, w2, b2, g2, be2)

    return out.reshape(B, N, Cemb), (Ho, Wo)


def patch_embedding_ref(x, w, b, gamma, beta, *, stride=2, eps=1e-5):
    """Pure-JAX (f32) reference mirroring the PyTorch forward."""
    k = w.shape[-1]
    pad = k // 2
    y = jax.lax.conv_general_dilated(
        x, w, window_strides=(stride, stride),
        padding=((pad, pad), (pad, pad)),
        dimension_numbers=('NCHW', 'OIHW', 'NCHW'))
    y = y + b[None, :, None, None]
    B, C, Ho, Wo = y.shape
    y = y.transpose(0, 2, 3, 1).reshape(B, Ho * Wo, C)
    mean = jnp.mean(y, axis=-1, keepdims=True)
    var = jnp.mean((y - mean) ** 2, axis=-1, keepdims=True)
    yn = (y - mean) / jnp.sqrt(var + eps) * gamma + beta
    return yn, (Ho, Wo)


if __name__ == "__main__":
    B, Cin, H, W = 2, 3, 16, 16
    Cemb, k, stride = 128, 3, 2

    key = jax.random.PRNGKey(0)
    kx, kw_, kb, kg, kbt = jax.random.split(key, 5)
    x = jax.random.normal(kx, (B, Cin, H, W), dtype=jnp.float32)
    w = 0.05 * jax.random.normal(kw_, (Cemb, Cin, k, k), dtype=jnp.float32)
    b = 0.01 * jax.random.normal(kb, (Cemb,), dtype=jnp.float32)
    gamma = 1.0 + 0.1 * jax.random.normal(kg, (Cemb,), dtype=jnp.float32)
    beta = 0.05 * jax.random.normal(kbt, (Cemb,), dtype=jnp.float32)

    out, (Ho, Wo) = patch_embedding(x, w, b, gamma, beta, stride=stride)
    out = jax.block_until_ready(out)

    ref, (Hr, Wr) = patch_embedding_ref(x, w, b, gamma, beta, stride=stride)
    assert (Ho, Wo) == (Hr, Wr) == (H // stride, W // stride)
    assert out.shape == (B, Ho * Wo, Cemb)
    # bf16 matmul operands (f32 accumulation) vs f32 reference -> relaxed tol.
    assert jnp.allclose(out, ref, rtol=5e-2, atol=5e-2), "mismatch vs reference"

    print("KERNEL_OK")
</pallas_src>

<mosaic_0001>
module attributes {stable_mosaic.version = 11 : i64} {
  func.func @_patch_embed_kernel(%arg0: i32, %arg1: memref<128x27xbf16, #tpu.memory_space<vmem>>, %arg2: memref<27x128xbf16, #tpu.memory_space<vmem>>, %arg3: memref<1x128xf32, #tpu.memory_space<vmem>>, %arg4: memref<1x128xf32, #tpu.memory_space<vmem>>, %arg5: memref<1x128xf32, #tpu.memory_space<vmem>>, %arg6: memref<128x128xf32, #tpu.memory_space<vmem>>) attributes {dimension_semantics = [#tpu.dimension_semantics<parallel>], iteration_bounds = array<i64: 1>, scalar_prefetch = 0 : i64, scratch_operands = 0 : i64, tpu.core_type = #tpu.core_type<tc>, window_params = [{transform_indices = @transform_0, window_bounds = array<i64: 128, 27>}, {pipeline_mode = #tpu.pipeline_mode<synchronous>, transform_indices = @transform_1, window_bounds = array<i64: 27, 128>}, {pipeline_mode = #tpu.pipeline_mode<synchronous>, transform_indices = @transform_2, window_bounds = array<i64: 1, 128>}, {pipeline_mode = #tpu.pipeline_mode<synchronous>, transform_indices = @transform_3, window_bounds = array<i64: 1, 128>}, {pipeline_mode = #tpu.pipeline_mode<synchronous>, transform_indices = @transform_4, window_bounds = array<i64: 1, 128>}, {transform_indices = @transform_5, window_bounds = array<i64: 128, 128>}]} {
    %c0 = arith.constant 0 : index
    %c0_0 = arith.constant 0 : index
    %0 = vector.load %arg1[%c0, %c0_0] : memref<128x27xbf16, #tpu.memory_space<vmem>>, vector<128x27xbf16>
    %c0_1 = arith.constant 0 : index
    %c0_2 = arith.constant 0 : index
    %1 = vector.load %arg2[%c0_1, %c0_2] : memref<27x128xbf16, #tpu.memory_space<vmem>>, vector<27x128xbf16>
    %cst = arith.constant dense<0.000000e+00> : vector<128x128xf32>
    %2 = tpu.matmul %0, %1, %cst {dimension_numbers = #tpu.dot_dimension_numbers<[1], [0], [0], [1], [0, 0, 1, 1], [], []>} : vector<128x27xbf16>, vector<27x128xbf16>, vector<128x128xf32> -> vector<128x128xf32>
    %c0_3 = arith.constant 0 : index
    %c0_4 = arith.constant 0 : index
    %3 = vector.load %arg3[%c0_3, %c0_4] : memref<1x128xf32, #tpu.memory_space<vmem>>, vector<1x128xf32>
    %4 = vector.broadcast %3 : vector<1x128xf32> to vector<128x128xf32>
    %5 = arith.addf %2, %4 : vector<128x128xf32>
    %cst_5 = arith.constant dense<0.000000e+00> : vector<128xf32>
    %6 = vector.multi_reduction <add>, %5, %cst_5 [1] : vector<128x128xf32> to vector<128xf32>
    %7 = vector.shape_cast %6 : vector<128xf32> to vector<128x1xf32>
    %cst_6 = arith.constant 1.280000e+02 : f32
    %8 = vector.broadcast %cst_6 : f32 to vector<128x1xf32>
    %9 = arith.divf %7, %8 : vector<128x1xf32>
    %10 = vector.broadcast %9 : vector<128x1xf32> to vector<128x128xf32>
    %11 = arith.subf %5, %10 : vector<128x128xf32>
    %12 = arith.mulf %11, %11 : vector<128x128xf32>
    %cst_7 = arith.constant dense<0.000000e+00> : vector<128xf32>
    %13 = vector.multi_reduction <add>, %12, %cst_7 [1] : vector<128x128xf32> to vector<128xf32>
    %14 = vector.shape_cast %13 : vector<128xf32> to vector<128x1xf32>
    %cst_8 = arith.constant 1.280000e+02 : f32
    %15 = vector.broadcast %cst_8 : f32 to vector<128x1xf32>
    %16 = arith.divf %14, %15 : vector<128x1xf32>
    %cst_9 = arith.constant 9.99999974E-6 : f32
    %17 = vector.broadcast %cst_9 : f32 to vector<128x1xf32>
    %18 = arith.addf %16, %17 : vector<128x1xf32>
    %19 = math.rsqrt %18 : vector<128x1xf32>
    %20 = vector.broadcast %19 : vector<128x1xf32> to vector<128x128xf32>
    %21 = arith.mulf %11, %20 : vector<128x128xf32>
    %c0_10 = arith.constant 0 : index
    %c0_11 = arith.constant 0 : index
    %22 = vector.load %arg4[%c0_10, %c0_11] : memref<1x128xf32, #tpu.memory_space<vmem>>, vector<1x128xf32>
    %23 = vector.broadcast %22 : vector<1x128xf32> to vector<128x128xf32>
    %24 = arith.mulf %21, %23 : vector<128x128xf32>
    %c0_12 = arith.constant 0 : index
    %c0_13 = arith.constant 0 : index
    %25 = vector.load %arg5[%c0_12, %c0_13] : memref<1x128xf32, #tpu.memory_space<vmem>>, vector<1x128xf32>
    %26 = vector.broadcast %25 : vector<1x128xf32> to vector<128x128xf32>
    %27 = arith.addf %24, %26 : vector<128x128xf32>
    %c0_14 = arith.constant 0 : index
    %c0_15 = arith.constant 0 : index
    %28 = vector.load %arg6[%c0_14, %c0_15] : memref<128x128xf32, #tpu.memory_space<vmem>>, vector<128x128xf32>
    tpu.vector_store %arg6[%c0_14, %c0_15], %27 {strides = array<i32>} : memref<128x128xf32, #tpu.memory_space<vmem>>, vector<128x128xf32>,
    return
  }
  func.func @transform_0(%arg0: i32) -> (i32, i32) {
    %c0_i32 = arith.constant 0 : i32
    %c0_i32_0 = arith.constant 0 : i32
    return %arg0, %c0_i32 : i32, i32
  }
  func.func @transform_1(%arg0: i32) -> (i32, i32) {
    %c0_i32 = arith.constant 0 : i32
    %c0_i32_0 = arith.constant 0 : i32
    %c0_i32_1 = arith.constant 0 : i32
    return %c0_i32, %c0_i32_0 : i32, i32
  }
  func.func @transform_2(%arg0: i32) -> (i32, i32) {
    %c0_i32 = arith.constant 0 : i32
    %c0_i32_0 = arith.constant 0 : i32
    %c0_i32_1 = arith.constant 0 : i32
    return %c0_i32, %c0_i32_0 : i32, i32
  }
  func.func @transform_3(%arg0: i32) -> (i32, i32) {
    %c0_i32 = arith.constant 0 : i32
    %c0_i32_0 = arith.constant 0 : i32
    %c0_i32_1 = arith.constant 0 : i32
    return %c0_i32, %c0_i32_0 : i32, i32
  }
  func.func @transform_4(%arg0: i32) -> (i32, i32) {
    %c0_i32 = arith.constant 0 : i32
    %c0_i32_0 = arith.constant 0 : i32
    %c0_i32_1 = arith.constant 0 : i32
    return %c0_i32, %c0_i32_0 : i32, i32
  }
  func.func @transform_5(%arg0: i32) -> (i32, i32) {
    %c0_i32 = arith.constant 0 : i32
    %c0_i32_0 = arith.constant 0 : i32
    return %arg0, %c0_i32 : i32, i32
  }
}

</mosaic_0001>

<bundles_post_ra>
// kernel: tpu_custom_call.1
= control target key start
LH: loop header
LB: loop body
LE: loop exit
PB: predicated region body
PF: predicated region fallthrough
CT: control target
= control target key end

     0   :  { %vm122_vm0 = vcmask 1044480   ;;  %vm123_vm1 = vcmask 1045504   ;;  %v711_v3 = vmov 65535   ;;  %s1092_s0 = inlined_call_operand.vmem [shape: bf16[128,27], index: 0, kind: input, shape index: {}]   ;;  %s1093_s1 = inlined_call_operand.vmem [shape: bf16[27,128], index: 1, kind: input, shape index: {}]   ;;  %s1094_s2 = inlined_call_operand.vmem [shape: f32[1,128], index: 2, kind: input, shape index: {}]   ;;  %s1095_s3 = inlined_call_operand.vmem [shape: f32[1,128], index: 3, kind: input, shape index: {}]   ;;  %s1096_s4 = inlined_call_operand.vmem [shape: f32[1,128], index: 4, kind: input, shape index: {}]   ;;  %s1097_s5 = inlined_call_operand.hbm [shape: f32[128,128], index: 5, kind: output, shape index: {}]  }
   0x1   :  { %v617_v0 = vld [vmem:[%s1093_s1 + $0x8] sm:$0xf]  ;;  %v636_v1 = vld [vmem:[%s1093_s1 + $0x8] sm:$0x30]  ;;  %v124_v4 = vsel %vm122_vm0, 4294967295, %v711_v3 }
   0x2   :  { %v618_v2 = vor.u32 %v636_v1, %v617_v0  ;;  %v125_v5 = vsel %vm123_vm1, %v124_v4, 0 }
   0x4   :  { %v127_v6 = vand.u32 %v618_v2, %v125_v5 }
   0x5   :  { %10 = vsyncpa [#allocation3], 0  ;;  %v635_v7 = vld [vmem:[%s1093_s1] sm:$0xff]  ;;  %v629_v9 = vld [vmem:[%s1092_s0 + $0x10] sm:$0xff]  ;;  %vm97_vm2 = vcmask 220160   ;;  %v712_v49 = vmov 128.0  }
   0x6   :  { %135 = vmatpush.bf16.msra.mxu0 %v127_v6  ;;  %637 = vmatpush.bf16.msra.mxu1 %v127_v6  ;;  %v627_v8 = vld [vmem:[%s1092_s0] sm:$0xff]  ;;  %v633_v11 = vld [vmem:[%s1092_s0 + $0x30] sm:$0xff]  ;;  %v628_v12 = vld [vmem:[%s1092_s0 + $0x8] sm:$0xff]  ;;  %651 = vrcp.f32 %v712_v49  ;;  %s567_s20 = sshll.u32 %s1097_s5, 4  ;;  %s714_s21 = smov 128   ;;  %s568_s20 = int_to_ptr.hbm [resolvable:$true] %s567_s20 }
   0x7   :  { %638 = vmatpush.bf16.msra.mxu2 %v127_v6  ;;  %639 = vmatpush.bf16.msra.mxu3 %v127_v6  ;;  %v631_v10 = vld [vmem:[%s1092_s0 + $0x20] sm:$0xff]  ;;  %v630_v13 = vld [vmem:[%s1092_s0 + $0x18] sm:$0xff]  ;;  %v632_v14 = vld [vmem:[%s1092_s0 + $0x28] sm:$0xff]  ;;  %s715_s22 = smov 8  }
   0x8   :  { %v634_v15 = vld [vmem:[%s1092_s0 + $0x38] sm:$0xff]  ;;  %v648_v16 = vld [vmem:[%s1094_s2] ss:$0 sm:$0xff] }
   0xa   :  { %136 = vmatpush.bf16.msra.mxu0 %v635_v7  ;;  %640 = vmatpush.bf16.msra.mxu1 %v635_v7 }
   0xb   :  { %641 = vmatpush.bf16.msra.mxu2 %v635_v7  ;;  %642 = vmatpush.bf16.msra.mxu3 %v635_v7 }
   0xc   :  { %v652_v50 = vpop.eup %651 }
   0xd   :  { %619 = vmatmul.msk.bf16.vlgmr.msra.gmra.mxu0 %vm97_vm2, %v627_v8  ;;  %621 = vmatmul.msk.bf16.vlgmr.msra.gmra.mxu1 %vm97_vm2, %v629_v9  ;;  %v211_v51 = vmul.f32 128.0, %v652_v50  ;;  %vm215_vm3 = vweird.f32 %v652_v50 }
   0xe   :  { %623 = vmatmul.msk.bf16.vlgmr.msra.gmra.mxu2 %vm97_vm2, %v631_v10  ;;  %625 = vmatmul.msk.bf16.vlgmr.msra.gmra.mxu3 %vm97_vm2, %v633_v11 }
   0xf   :  { %v212_v52 = vsub.f32 1.0, %v211_v51 }
  0x11   :  { %v213_v53 = vmul.f32 %v652_v50, %v212_v52 }
  0x13   :  { %v214_v54 = vadd.f32 %v652_v50, %v213_v53 }
  0x15   :  { %v832_v55 = vsel %vm215_vm3, %v652_v50, %v214_v54 }
  0x1d   :  { %620 = vmatmul.msk.bf16.gmra.mxu0 %vm97_vm2, %v628_v12  ;;  %622 = vmatmul.msk.bf16.gmra.mxu1 %vm97_vm2, %v630_v13 }
  0x1e   :  { %624 = vmatmul.msk.bf16.gmra.mxu2 %vm97_vm2, %v632_v14  ;;  %626 = vmatmul.msk.bf16.gmra.mxu3 %vm97_vm2, %v634_v15 }
  0x8a   :  { %v138_v17 = vpop.f32.mrf.mxu0  ;;  %v148_v18 = vpop.f32.mrf.mxu1 }
  0x8b   :  { %v139_v19 = vadd.f32 %v648_v16, %v138_v17  ;;  %v149_v20 = vadd.f32 %v648_v16, %v148_v18 }
  0x8d   :  { %186 = vadd.xlane.f32.xlu2 %v149_v20  ;;  %178 = vadd.xlane.f32.xlu0 %v139_v19 }
  0x91   :  { %v158_v21 = vpop.f32.mrf.mxu2  ;;  %v168_v22 = vpop.f32.mrf.mxu3 }
  0x92   :  { %v790_v23 = vadd.f32 %v648_v16, %v158_v21  ;;  %v792_v24 = vadd.f32 %v648_v16, %v168_v22  ;;  %v140_v25 = vpop.f32.mrf.mxu0  ;;  %v150_v26 = vpop.f32.mrf.mxu1 }
  0x93   :  { %v798_v30 = vadd.f32 %v648_v16, %v140_v25  ;;  %v800_v31 = vadd.f32 %v648_v16, %v150_v26 }
  0x95   :  { %194 = vadd.xlane.f32.xlu2 %v790_v23  ;;  %202 = vadd.xlane.f32.xlu0 %v792_v24 }
  0x99   :  { %v160_v27 = vpop.f32.mrf.mxu2  ;;  %v170_v28 = vpop.f32.mrf.mxu3 }
  0x9a   :  { %v796_v29 = vadd.f32 %v648_v16, %v170_v28  ;;  %v143_v32 = vpop.f32.mrf.mxu0  ;;  %v807_v35 = vadd.f32 %v648_v16, %v160_v27  ;;  %v153_v38 = vpop.f32.mrf.mxu1 }
  0x9b   :  { %v805_v33 = vadd.f32 %v648_v16, %v143_v32  ;;  %v813_v39 = vadd.f32 %v648_v16, %v153_v38 }
  0x9c   :  { %204 = vadd.xlane.f32.xlu1 %v796_v29 }
  0x9d   :  { %188 = vadd.xlane.f32.xlu2 %v800_v31  ;;  %180 = vadd.xlane.f32.xlu0 %v798_v30 }
  0xa1   :  { %v163_v34 = vpop.f32.mrf.mxu2  ;;  %v173_v36 = vpop.f32.mrf.mxu3 }
  0xa2   :  { %v811_v37 = vadd.f32 %v648_v16, %v163_v34  ;;  %v145_v43 = vpop.f32.mrf.mxu0  ;;  %v820_v44 = vadd.f32 %v648_v16, %v173_v36  ;;  %v155_v47 = vpop.f32.mrf.mxu1 }
  0xa3   :  { %v824_v46 = vadd.f32 %v648_v16, %v145_v43  ;;  %v829_v48 = vadd.f32 %v648_v16, %v155_v47 }
  0xa4   :  { %182 = vadd.xlane.f32.xlu1 %v805_v33 }
  0xa5   :  { %196 = vadd.xlane.f32.xlu0 %v807_v35 }
  0xa9   :  { %v165_v40 = vpop.f32.mrf.mxu2  ;;  %v175_v42 = vpop.f32.mrf.mxu3 }
  0xaa   :  { %v815_v41 = vadd.f32 %v648_v16, %v165_v40  ;;  %v822_v45 = vadd.f32 %v648_v16, %v175_v42 }
  0xac   :  { %200 = vadd.xlane.f32.xlu2 %v815_v41  ;;  %198 = vadd.xlane.f32.xlu1 %v811_v37 }
  0xad   :  { %190 = vadd.xlane.f32.xlu0 %v813_v39 }
  0xb4   :  { %206 = vadd.xlane.f32.xlu2 %v820_v44  ;;  %184 = vadd.xlane.f32.xlu1 %v824_v46 }
  0xb5   :  { %208 = vadd.xlane.f32.xlu0 %v822_v45 }
  0xbc   :  { %192 = vadd.xlane.f32.xlu1 %v829_v48 }
 0x100   :  { %v187_v56 = vpop.xlane.xlu2 %186  ;;  %v179_v57 = vpop.xlane.xlu0 %178 }
 0x101   :  { %v221_v58 = vmul.f32 %v832_v55, %v187_v56  ;;  %v217_v59 = vmul.f32 %v832_v55, %v179_v57 }
 0x103   :  { %v836_v60 = vsub.f32 %v149_v20, %v221_v58  ;;  %v838_v61 = vsub.f32 %v139_v19, %v217_v59 }
 0x105   :  { %v253_v62 = vmul.f32 %v836_v60, %v836_v60  ;;  %v249_v63 = vmul.f32 %v838_v61, %v838_v61 }
 0x107   :  { %273 = vadd.xlane.f32.xlu2 %v253_v62  ;;  %265 = vadd.xlane.f32.xlu1 %v249_v63 }
 0x108   :  { %v195_v0 = vpop.xlane.xlu2 %194  ;;  %v203_v1 = vpop.xlane.xlu0 %202 }
 0x109   :  { %v225_v2 = vmul.f32 %v832_v55, %v195_v0  ;;  %v229_v3 = vmul.f32 %v832_v55, %v203_v1 }
 0x10b   :  { %v847_v4 = vsub.f32 %v790_v23, %v225_v2  ;;  %v850_v5 = vsub.f32 %v792_v24, %v229_v3 }
 0x10d   :  { %v257_v6 = vmul.f32 %v847_v4, %v847_v4  ;;  %v261_v7 = vmul.f32 %v850_v5, %v850_v5 }
 0x10f   :  { %v205_v8 = vpop.xlane.xlu1 %204  ;;  %281 = vadd.xlane.f32.xlu0 %v257_v6  ;;  %289 = vadd.xlane.f32.xlu1 %v261_v7 }
 0x110   :  { %v189_v9 = vpop.xlane.xlu2 %188  ;;  %v181_v10 = vpop.xlane.xlu0 %180  ;;  %v230_v54 = vmul.f32 %v832_v55, %v205_v8 }
 0x111   :  { %v222_v11 = vmul.f32 %v832_v55, %v189_v9  ;;  %v218_v12 = vmul.f32 %v832_v55, %v181_v10 }
 0x112   :  { %v924_v58 = vsub.f32 %v796_v29, %v230_v54 }
 0x113   :  { %v859_v13 = vsub.f32 %v800_v31, %v222_v11  ;;  %v862_v14 = vsub.f32 %v798_v30, %v218_v12 }
 0x115   :  { %v254_v15 = vmul.f32 %v859_v13, %v859_v13  ;;  %v250_v16 = vmul.f32 %v862_v14, %v862_v14 }
 0x117   :  { %v183_v17 = vpop.xlane.xlu1 %182  ;;  %275 = vadd.xlane.f32.xlu0 %v254_v15  ;;  %267 = vadd.xlane.f32.xlu2 %v250_v16 }
 0x118   :  { %v219_v18 = vmul.f32 %v832_v55, %v183_v17  ;;  %v197_v19 = vpop.xlane.xlu0 %196 }
 0x119   :  { %v226_v20 = vmul.f32 %v832_v55, %v197_v19 }
 0x11a   :  { %v871_v21 = vsub.f32 %v805_v33, %v219_v18 }
 0x11b   :  { %v874_v22 = vsub.f32 %v807_v35, %v226_v20 }
 0x11c   :  { %v251_v23 = vmul.f32 %v871_v21, %v871_v21 }
 0x11d   :  { %v258_v24 = vmul.f32 %v874_v22, %v874_v22 }
 0x11f   :  { %v201_v25 = vpop.xlane.xlu2 %200  ;;  %v199_v26 = vpop.xlane.xlu1 %198  ;;  %269 = vadd.xlane.f32.xlu0 %v251_v23  ;;  %283 = vadd.xlane.f32.xlu1 %v258_v24 }
 0x120   :  { %v228_v27 = vmul.f32 %v832_v55, %v201_v25  ;;  %v227_v28 = vmul.f32 %v832_v55, %v199_v26  ;;  %v191_v30 = vpop.xlane.xlu0 %190 }
 0x121   :  { %v223_v31 = vmul.f32 %v832_v55, %v191_v30 }
 0x122   :  { %v884_v32 = vsub.f32 %v815_v41, %v228_v27  ;;  %v887_v33 = vsub.f32 %v811_v37, %v227_v28 }
 0x123   :  { %v890_v34 = vsub.f32 %v813_v39, %v223_v31 }
 0x124   :  { %v259_v35 = vmul.f32 %v887_v33, %v887_v33  ;;  %v260_v36 = vmul.f32 %v884_v32, %v884_v32 }
 0x125   :  { %v255_v38 = vmul.f32 %v890_v34, %v890_v34 }
 0x126   :  { %285 = vadd.xlane.f32.xlu2 %v259_v35 }
 0x127   :  { %v207_v40 = vpop.xlane.xlu2 %206  ;;  %v185_v42 = vpop.xlane.xlu1 %184  ;;  %287 = vadd.xlane.f32.xlu0 %v260_v36  ;;  %277 = vadd.xlane.f32.xlu1 %v255_v38  ;;  %v948_v38 = vld [vmem:[%s1095_s3] ss:$0 sm:$0xff]  ;;  %s713_s3 = smov [#allocation2]  }
 0x128   :  { %v231_v37 = vmul.f32 %v832_v55, %v207_v40  ;;  %v220_v41 = vmul.f32 %v832_v55, %v185_v42  ;;  %v209_v47 = vpop.xlane.xlu0 %208 }
 0x129   :  { %v232_v49 = vmul.f32 %v832_v55, %v209_v47  ;;  %v956_v47 = vld [vmem:[%s1096_s4] ss:$0 sm:$0xff]  ;;  %s565_s4 = sshll.u32 %s713_s3, 4  ;;  %s566_s4 = int_to_ptr.vmem [resolvable:$true] %s565_s4 }
 0x12a   :  { %v901_v39 = vsub.f32 %v820_v44, %v231_v37  ;;  %v904_v43 = vsub.f32 %v824_v46, %v220_v41 }
 0x12b   :  { %v913_v44 = vsub.f32 %v822_v45, %v232_v49  ;;  %v262_v45 = vmul.f32 %v924_v58, %v924_v58 }
 0x12c   :  { %v263_v50 = vmul.f32 %v901_v39, %v901_v39  ;;  %v252_v51 = vmul.f32 %v904_v43, %v904_v43 }
 0x12d   :  { %v264_v57 = vmul.f32 %v913_v44, %v913_v44 }
 0x12f   :  { %v193_v52 = vpop.xlane.xlu1 %192  ;;  %293 = vadd.xlane.f32.xlu0 %v263_v50  ;;  %271 = vadd.xlane.f32.xlu1 %v252_v51 }
 0x130   :  { %v224_v53 = vmul.f32 %v832_v55, %v193_v52 }
 0x132   :  { %v916_v46 = vsub.f32 %v829_v48, %v224_v53 }
 0x134   :  { %v256_v56 = vmul.f32 %v916_v46, %v916_v46 }
 0x136   :  { %279 = vadd.xlane.f32.xlu2 %v256_v56 }
 0x137   :  { %295 = vadd.xlane.f32.xlu1 %v264_v57 }
 0x13e   :  { %291 = vadd.xlane.f32.xlu2 %v262_v45 }
 0x17a   :  { %v274_v59 = vpop.xlane.xlu2 %273  ;;  %v266_v48 = vpop.xlane.xlu1 %265 }
 0x17b   :  { %v301_v62 = vmul.f32 %v274_v59, %v832_v55  ;;  %v297_v63 = vmul.f32 %v266_v48, %v832_v55 }
 0x17d   :  { %v317_v0 = vadd.f32 1e-05, %v301_v62  ;;  %v313_v1 = vadd.f32 1e-05, %v297_v63 }
 0x17f   :  { %653 = vrsqrt.f32 %v317_v0  ;;  %vm375_vm6 = vweird.f32 %v317_v0  ;;  %vm335_vm8 = vweird.f32 %v313_v1 }
 0x180   :  { %655 = vrsqrt.f32 %v313_v1 }
 0x182   :  { %v290_v2 = vpop.xlane.xlu1 %289  ;;  %v282_v3 = vpop.xlane.xlu0 %281 }
 0x183   :  { %v309_v6 = vmul.f32 %v290_v2, %v832_v55  ;;  %v305_v29 = vmul.f32 %v282_v3, %v832_v55 }
 0x185   :  { %v654_v7 = vpop.eup %653  ;;  %v932_v8 = vadd.f32 1e-05, %v309_v6  ;;  %v934_v9 = vadd.f32 1e-05, %v305_v29 }
 0x186   :  { %v656_v10 = vpop.eup %655  ;;  %v370_v11 = vmul.f32 %v654_v7, %v317_v0  ;;  %vm376_vm4 = vweird.f32 %v654_v7 }
 0x187   :  { %v330_v12 = vmul.f32 %v656_v10, %v313_v1  ;;  %657 = vrsqrt.f32 %v932_v8  ;;  %vm336_vm5 = vweird.f32 %v656_v10  ;;  %vm377_vm7 = vmor %vm375_vm6, %vm376_vm4  ;;  %vm455_vm12 = vweird.f32 %v932_v8 }
 0x188   :  { %v371_v15 = vmul.f32 %v654_v7, %v370_v11  ;;  %659 = vrsqrt.f32 %v934_v9  ;;  %vm337_vm9 = vmor %vm335_vm8, %vm336_vm5  ;;  %vm415_vm14 = vweird.f32 %v934_v9 }
 0x189   :  { %v331_v16 = vmul.f32 %v656_v10, %v330_v12 }
 0x18a   :  { %v372_v17 = vmul.f32 0.5, %v371_v15  ;;  %v268_v18 = vpop.xlane.xlu2 %267  ;;  %v276_v19 = vpop.xlane.xlu0 %275 }
 0x18b   :  { %v332_v20 = vmul.f32 0.5, %v331_v16  ;;  %v298_v23 = vmul.f32 %v268_v18, %v832_v55  ;;  %v302_v24 = vmul.f32 %v276_v19, %v832_v55 }
 0x18c   :  { %v373_v25 = vsub.f32 1.5, %v372_v17 }
 0x18d   :  { %v658_v26 = vpop.eup %657  ;;  %v333_v27 = vsub.f32 1.5, %v332_v20  ;;  %v940_v28 = vadd.f32 1e-05, %v298_v23  ;;  %v942_v30 = vadd.f32 1e-05, %v302_v24 }
 0x18e   :  { %v660_v31 = vpop.eup %659  ;;  %v374_v35 = vmul.f32 %v654_v7, %v373_v25  ;;  %v450_v36 = vmul.f32 %v658_v26, %v932_v8  ;;  %vm456_vm10 = vweird.f32 %v658_v26 }
 0x18f   :  { %v334_v40 = vmul.f32 %v656_v10, %v333_v27  ;;  %v410_v42 = vmul.f32 %v660_v31, %v934_v9  ;;  %661 = vrsqrt.f32 %v940_v28  ;;  %vm416_vm11 = vweird.f32 %v660_v31  ;;  %vm457_vm13 = vmor %vm455_vm12, %vm456_vm10 }
 0x190   :  { %v378_v37 = vsel %vm377_vm7, %v654_v7, %v374_v35  ;;  %v451_v41 = vmul.f32 %v658_v26, %v450_v36  ;;  %663 = vrsqrt.f32 %v942_v30  ;;  %vm417_vm15 = vmor %vm415_vm14, %vm416_vm11  ;;  %vm345_vm0 = vweird.f32 %v940_v28 }
 0x191   :  { %v493_v49 = vmul.f32 %v378_v37, %v836_v60  ;;  %v338_v50 = vsel %vm337_vm9, %v656_v10, %v334_v40  ;;  %v411_v51 = vmul.f32 %v660_v31, %v410_v42  ;;  %vm385_vm4 = vweird.f32 %v942_v30 }
 0x192   :  { %v489_v52 = vmul.f32 %v338_v50, %v838_v61  ;;  %v452_v53 = vmul.f32 0.5, %v451_v41  ;;  %v284_v54 = vpop.xlane.xlu1 %283  ;;  %v270_v56 = vpop.xlane.xlu0 %269 }
 0x193   :  { %v513_v57 = vmul.f32 %v948_v38, %v493_v49  ;;  %v412_v45 = vmul.f32 0.5, %v411_v51  ;;  %v306_v59 = vmul.f32 %v284_v54, %v832_v55  ;;  %v299_v48 = vmul.f32 %v270_v56, %v832_v55 }
 0x194   :  { %v509_v62 = vmul.f32 %v948_v38, %v489_v52  ;;  %v453_v63 = vsub.f32 1.5, %v452_v53 }
 0x195   :  { %v662_v60 = vpop.eup %661  ;;  %v533_v0 = vadd.f32 %v956_v47, %v513_v57  ;;  %v413_v1 = vsub.f32 1.5, %v412_v45  ;;  %v965_v61 = vadd.f32 1e-05, %v306_v59  ;;  %v967_v2 = vadd.f32 1e-05, %v299_v48 }
 0x196   :  { %v664_v3 = vpop.eup %663  ;;  %v529_v6 = vadd.f32 %v956_v47, %v509_v62  ;;  %v454_v29 = vmul.f32 %v658_v26, %v453_v63  ;;  %v340_v7 = vmul.f32 %v662_v60, %v940_v28  ;;  %vm346_vm1 = vweird.f32 %v662_v60 }
 0x197   :  { %549 = vst [vmem:[#allocation2 + $0x20] sm:$0xff] %v533_v0  ;;  %v414_v10 = vmul.f32 %v660_v31, %v413_v1  ;;  %v380_v11 = vmul.f32 %v664_v3, %v942_v30  ;;  %665 = vrsqrt.f32 %v965_v61  ;;  %vm386_vm2 = vweird.f32 %v664_v3  ;;  %vm347_vm3 = vmor %vm345_vm0, %vm346_vm1 }
 0x198   :  { %545 = vst [vmem:[#allocation2] sm:$0xff] %v529_v6  ;;  %v458_v12 = vsel %vm457_vm13, %v658_v26, %v454_v29  ;;  %v341_v15 = vmul.f32 %v662_v60, %v340_v7  ;;  %667 = vrsqrt.f32 %v967_v2  ;;  %vm387_vm5 = vmor %vm385_vm4, %vm386_vm2  ;;  %vm425_vm8 = vweird.f32 %v965_v61 }
 0x199   :  { %v501_v8 = vmul.f32 %v458_v12, %v850_v5  ;;  %v418_v16 = vsel %vm417_vm15, %v660_v31, %v414_v10  ;;  %v381_v17 = vmul.f32 %v664_v3, %v380_v11  ;;  %v286_v18 = vpop.xlane.xlu2 %285  ;;  %vm355_vm10 = vweird.f32 %v967_v2 }
 0x19a   :  { %v497_v19 = vmul.f32 %v418_v16, %v847_v4  ;;  %v342_v20 = vmul.f32 0.5, %v341_v15  ;;  %v307_v9 = vmul.f32 %v286_v18, %v832_v55  ;;  %v278_v23 = vpop.xlane.xlu1 %277  ;;  %v288_v24 = vpop.xlane.xlu0 %287 }
 0x19b   :  { %v521_v25 = vmul.f32 %v948_v38, %v501_v8  ;;  %v382_v26 = vmul.f32 0.5, %v381_v17  ;;  %v303_v27 = vmul.f32 %v278_v23, %v832_v55  ;;  %v308_v35 = vmul.f32 %v288_v24, %v832_v55 }
 0x19c   :  { %v517_v5 = vmul.f32 %v948_v38, %v497_v19  ;;  %v343_v31 = vsub.f32 1.5, %v342_v20  ;;  %v985_v36 = vadd.f32 1e-05, %v307_v9 }
 0x19d   :  { %v666_v4 = vpop.eup %665  ;;  %v541_v40 = vadd.f32 %v956_v47, %v521_v25  ;;  %v383_v42 = vsub.f32 1.5, %v382_v26  ;;  %v988_v37 = vadd.f32 1e-05, %v303_v27  ;;  %v992_v52 = vadd.f32 1e-05, %v308_v35 }
 0x19e   :  { %v668_v41 = vpop.eup %667  ;;  %v537_v49 = vadd.f32 %v956_v47, %v517_v5  ;;  %v344_v50 = vmul.f32 %v662_v60, %v343_v31  ;;  %v420_v51 = vmul.f32 %v666_v4, %v965_v61  ;;  %669 = vrsqrt.f32 %v985_v36 }
 0x19f   :  { %557 = vst [vmem:[#allocation2 + $0x60] sm:$0xff] %v541_v40  ;;  %v384_v53 = vmul.f32 %v664_v3, %v383_v42  ;;  %v350_v54 = vmul.f32 %v668_v41, %v967_v2  ;;  %671 = vrsqrt.f32 %v988_v37  ;;  %vm426_vm6 = vweird.f32 %v666_v4 }
 0x1a0   :  { %553 = vst [vmem:[#allocation2 + $0x40] sm:$0xff] %v537_v49  ;;  %v348_v56 = vsel %vm347_vm3, %v662_v60, %v344_v50  ;;  %v421_v57 = vmul.f32 %v666_v4, %v420_v51  ;;  %673 = vrsqrt.f32 %v992_v52  ;;  %vm356_vm7 = vweird.f32 %v668_v41  ;;  %vm427_vm9 = vmor %vm425_vm8, %vm426_vm6 }
 0x1a1   :  { %v490_v45 = vmul.f32 %v348_v56, %v862_v14  ;;  %v388_v59 = vsel %vm387_vm5, %v664_v3, %v384_v53  ;;  %v351_v48 = vmul.f32 %v668_v41, %v350_v54  ;;  %vm357_vm11 = vmor %vm355_vm10, %vm356_vm7  ;;  %vm435_vm12 = vweird.f32 %v985_v36 }
 0x1a2   :  { %v494_v28 = vmul.f32 %v388_v59, %v859_v13  ;;  %v422_v62 = vmul.f32 0.5, %v421_v57  ;;  %v272_v30 = vpop.xlane.xlu1 %271  ;;  %v294_v63 = vpop.xlane.xlu0 %293  ;;  %vm395_vm13 = vweird.f32 %v988_v37  ;;  %vm445_vm3 = vweird.f32 %v992_v52 }
 0x1a3   :  { %v510_v0 = vmul.f32 %v948_v38, %v490_v45  ;;  %v352_v1 = vmul.f32 0.5, %v351_v48  ;;  %v300_v60 = vmul.f32 %v272_v30, %v832_v55  ;;  %v311_v6 = vmul.f32 %v294_v63, %v832_v55 }
 0x1a4   :  { %v514_v29 = vmul.f32 %v948_v38, %v494_v28  ;;  %v423_v7 = vsub.f32 1.5, %v422_v62  ;;  %v1008_v14 = vpop.eup %669 }
 0x1a5   :  { %v530_v13 = vadd.f32 %v956_v47, %v510_v0  ;;  %v353_v3 = vsub.f32 1.5, %v352_v1  ;;  %v1011_v10 = vadd.f32 1e-05, %v300_v60  ;;  %v1013_v11 = vadd.f32 1e-05, %v311_v6  ;;  %v1015_v12 = vpop.eup %671 }
 0x1a6   :  { %v534_v15 = vadd.f32 %v956_v47, %v514_v29  ;;  %v424_v8 = vmul.f32 %v666_v4, %v423_v7  ;;  %v430_v16 = vmul.f32 %v1008_v14, %v985_v36  ;;  %v390_v18 = vmul.f32 %v1015_v12, %v988_v37  ;;  %v674_v19 = vpop.eup %673 }
 0x1a7   :  { %546 = vst [vmem:[#allocation2 + $0x8] sm:$0xff] %v530_v13  ;;  %v354_v17 = vmul.f32 %v668_v41, %v353_v3  ;;  %675 = vrsqrt.f32 %v1011_v10  ;;  %v440_v2 = vmul.f32 %v674_v19, %v992_v52  ;;  %vm436_vm14 = vweird.f32 %v1008_v14 }
 0x1a8   :  { %550 = vst [vmem:[#allocation2 + $0x28] sm:$0xff] %v534_v15  ;;  %v428_v20 = vsel %vm427_vm9, %v666_v4, %v424_v8  ;;  %v431_v61 = vmul.f32 %v1008_v14, %v430_v16  ;;  %677 = vrsqrt.f32 %v1013_v11  ;;  %v391_v24 = vmul.f32 %v1015_v12, %v390_v18  ;;  %vm437_vm0 = vmor %vm435_vm12, %vm436_vm14 }
 0x1a9   :  { %v498_v9 = vmul.f32 %v428_v20, %v874_v22  ;;  %v358_v23 = vsel %vm357_vm11, %v668_v41, %v354_v17  ;;  %v280_v25 = vpop.xlane.xlu2 %279  ;;  %v441_v31 = vmul.f32 %v674_v19, %v440_v2  ;;  %vm396_vm15 = vweird.f32 %v1015_v12 }
 0x1aa   :  { %v491_v26 = vmul.f32 %v358_v23, %v871_v21  ;;  %v432_v27 = vmul.f32 0.5, %v431_v61  ;;  %v392_v5 = vmul.f32 0.5, %v391_v24  ;;  %v304_v4 = vmul.f32 %v280_v25, %v832_v55  ;;  %v296_v22 = vpop.xlane.xlu1 %295  ;;  %vm397_vm2 = vmor %vm395_vm13, %vm396_vm15 }
 0x1ab   :  { %v518_v35 = vmul.f32 %v948_v38, %v498_v9  ;;  %v442_v50 = vmul.f32 0.5, %v441_v31  ;;  %v312_v45 = vmul.f32 %v296_v22, %v832_v55  ;;  %vm446_vm1 = vweird.f32 %v674_v19 }
 0x1ac   :  { %v511_v40 = vmul.f32 %v948_v38, %v491_v26  ;;  %v433_v42 = vsub.f32 1.5, %v432_v27  ;;  %v393_v49 = vsub.f32 1.5, %v392_v5  ;;  %v1040_v51 = vadd.f32 1e-05, %v304_v4  ;;  %vm447_vm4 = vmor %vm445_vm3, %vm446_vm1 }
 0x1ad   :  { %v676_v21 = vpop.eup %675  ;;  %v538_v41 = vadd.f32 %v956_v47, %v518_v35  ;;  %v443_v48 = vsub.f32 1.5, %v442_v50  ;;  %v328_v7 = vadd.f32 1e-05, %v312_v45  ;;  %vm365_vm7 = vweird.f32 %v1011_v10 }
 0x1ae   :  { %v678_v53 = vpop.eup %677  ;;  %v531_v54 = vadd.f32 %v956_v47, %v511_v40  ;;  %v434_v56 = vmul.f32 %v1008_v14, %v433_v42  ;;  %v360_v57 = vmul.f32 %v676_v21, %v1011_v10  ;;  %v394_v59 = vmul.f32 %v1015_v12, %v393_v49 }
 0x1af   :  { %554 = vst [vmem:[#allocation2 + $0x48] sm:$0xff] %v538_v41  ;;  %v470_v28 = vmul.f32 %v678_v53, %v1013_v11  ;;  %679 = vrsqrt.f32 %v1040_v51  ;;  %v444_v0 = vmul.f32 %v674_v19, %v443_v48  ;;  %vm366_vm5 = vweird.f32 %v676_v21 }
 0x1b0   :  { %547 = vst [vmem:[#allocation2 + $0x10] sm:$0xff] %v531_v54  ;;  %v438_v62 = vsel %vm437_vm0, %v1008_v14, %v434_v56  ;;  %v361_v30 = vmul.f32 %v676_v21, %v360_v57  ;;  %v398_v63 = vsel %vm397_vm2, %v1015_v12, %v394_v59  ;;  %681 = vrsqrt.f32 %v328_v7  ;;  %vm367_vm8 = vmor %vm365_vm7, %vm366_vm5 }
 0x1b1   :  { %v499_v36 = vmul.f32 %v438_v62, %v887_v33  ;;  %v471_v1 = vmul.f32 %v678_v53, %v470_v28  ;;  %v292_v60 = vpop.xlane.xlu2 %291  ;;  %v495_v6 = vmul.f32 %v398_v63, %v890_v34  ;;  %v448_v52 = vsel %vm447_vm4, %v674_v19, %v444_v0 }
 0x1b2   :  { %v362_v29 = vmul.f32 0.5, %v361_v30  ;;  %v310_v37 = vmul.f32 %v292_v60, %v832_v55  ;;  %v500_v33 = vmul.f32 %v448_v52, %v884_v32  ;;  %vm476_vm6 = vweird.f32 %v678_v53 }
 0x1b3   :  { %v519_v14 = vmul.f32 %v948_v38, %v499_v36  ;;  %v472_v13 = vmul.f32 0.5, %v471_v1  ;;  %v515_v3 = vmul.f32 %v948_v38, %v495_v6  ;;  %vm475_vm9 = vweird.f32 %v1013_v11 }
 0x1b4   :  { %v363_v12 = vsub.f32 1.5, %v362_v29  ;;  %v326_v34 = vadd.f32 1e-05, %v310_v37  ;;  %v520_v55 = vmul.f32 %v948_v38, %v500_v33  ;;  %vm477_vm10 = vmor %vm475_vm9, %vm476_vm6  ;;  %vm405_vm12 = vweird.f32 %v1040_v51 }
 0x1b5   :  { %v539_v15 = vadd.f32 %v956_v47, %v519_v14  ;;  %v473_v8 = vsub.f32 1.5, %v472_v13  ;;  %v680_v16 = vpop.eup %679  ;;  %v535_v17 = vadd.f32 %v956_v47, %v515_v3  ;;  %vm485_vm15 = vweird.f32 %v328_v7 }
 0x1b6   :  { %v364_v18 = vmul.f32 %v676_v21, %v363_v12  ;;  %v400_v32 = vmul.f32 %v680_v16, %v1040_v51  ;;  %683 = vrsqrt.f32 %v326_v34  ;;  %v540_v20 = vadd.f32 %v956_v47, %v520_v55  ;;  %v682_v10 = vpop.eup %681 }
 0x1b7   :  { %555 = vst [vmem:[#allocation2 + $0x50] sm:$0xff] %v539_v15  ;;  %v474_v19 = vmul.f32 %v678_v53, %v473_v8  ;;  %v480_v26 = vmul.f32 %v682_v10, %v328_v7  ;;  %vm406_vm11 = vweird.f32 %v680_v16  ;;  %vm486_vm14 = vweird.f32 %v682_v10 }
 0x1b8   :  { %551 = vst [vmem:[#allocation2 + $0x30] sm:$0xff] %v535_v17  ;;  %v368_v61 = vsel %vm367_vm8, %v676_v21, %v364_v18  ;;  %v401_v24 = vmul.f32 %v680_v16, %v400_v32  ;;  %vm407_vm13 = vmor %vm405_vm12, %vm406_vm11  ;;  %vm465_vm2 = vweird.f32 %v326_v34 }
 0x1b9   :  { %v492_v9 = vmul.f32 %v368_v61, %v904_v43  ;;  %v478_v23 = vsel %vm477_vm10, %v678_v53, %v474_v19  ;;  %556 = vst [vmem:[#allocation2 + $0x58] sm:$0xff] %v540_v20  ;;  %v481_v4 = vmul.f32 %v682_v10, %v480_v26  ;;  %vm487_vm0 = vmor %vm485_vm15, %vm486_vm14 }
 0x1ba   :  { %v503_v2 = vmul.f32 %v478_v23, %v901_v39  ;;  %v402_v11 = vmul.f32 0.5, %v401_v24 }
 0x1bb   :  { %v512_v25 = vmul.f32 %v948_v38, %v492_v9  ;;  %v482_v39 = vmul.f32 0.5, %v481_v4 }
 0x1bc   :  { %v523_v27 = vmul.f32 %v948_v38, %v503_v2  ;;  %v684_v35 = vpop.eup %683  ;;  %v403_v31 = vsub.f32 1.5, %v402_v11 }
 0x1bd   :  { %v532_v5 = vadd.f32 %v956_v47, %v512_v25  ;;  %v460_v22 = vmul.f32 %v684_v35, %v326_v34  ;;  %v483_v41 = vsub.f32 1.5, %v482_v39  ;;  %vm466_vm1 = vweird.f32 %v684_v35 }
 0x1be   :  { %v543_v43 = vadd.f32 %v956_v47, %v523_v27  ;;  %v404_v40 = vmul.f32 %v680_v16, %v403_v31  ;;  %vm467_vm3 = vmor %vm465_vm2, %vm466_vm1 }
 0x1bf   :  { %548 = vst [vmem:[#allocation2 + $0x18] sm:$0xff] %v532_v5  ;;  %v461_v42 = vmul.f32 %v684_v35, %v460_v22  ;;  %v484_v53 = vmul.f32 %v682_v10, %v483_v41 }
 0x1c0   :  { %559 = vst [vmem:[#allocation2 + $0x70] sm:$0xff] %v543_v43  ;;  %v408_v21 = vsel %vm407_vm13, %v680_v16, %v404_v40 }
 0x1c1   :  { %v496_v49 = vmul.f32 %v408_v21, %v916_v46  ;;  %v462_v50 = vmul.f32 0.5, %v461_v42  ;;  %v488_v57 = vsel %vm487_vm0, %v682_v10, %v484_v53 }
 0x1c2   :  { %v504_v45 = vmul.f32 %v488_v57, %v913_v44 }
 0x1c3   :  { %v516_v54 = vmul.f32 %v948_v38, %v496_v49  ;;  %v463_v56 = vsub.f32 1.5, %v462_v50 }
 0x1c4   :  { %v524_v48 = vmul.f32 %v948_v38, %v504_v45 }
 0x1c5   :  { %v536_v51 = vadd.f32 %v956_v47, %v516_v54  ;;  %v464_v59 = vmul.f32 %v684_v35, %v463_v56 }
 0x1c6   :  { %v544_v62 = vadd.f32 %v956_v47, %v524_v48 }
 0x1c7   :  { %552 = vst [vmem:[#allocation2 + $0x38] sm:$0xff] %v536_v51  ;;  %v468_v46 = vsel %vm467_vm3, %v684_v35, %v464_v59 }
 0x1c8   :  { %v502_v28 = vmul.f32 %v468_v46, %v924_v58  ;;  %560 = vst [vmem:[#allocation2 + $0x78] sm:$0xff] %v544_v62 }
 0x1ca   :  { %v522_v30 = vmul.f32 %v948_v38, %v502_v28 }
 0x1cc   :  { %v542_v44 = vadd.f32 %v956_v47, %v522_v30 }
 0x1ce   :  { %558 = vst [vmem:[#allocation2 + $0x68] sm:$0xff] %v542_v44 }
 0x1cf   :  { %573 = dma.vmem_to_hbm [thread:$0]  %s566_s4, 2048, %s568_s20, [#allocation3], %s714_s21, %s714_s21, %s715_s22  }
 0x1d0   :  { %709 = dma.done.wait [#allocation3], 2048  }
 0x1d1   :  { %710 = vsyncadd [#allocation3], 4294965248 }
 0x1d2   :  { %578 = vsyncpa [#allocation3], 1 }

</bundles_post_ra>
